<compile_context>
chip_gen: v7x
topology: tpu7x:2x2x1
jax: 0.10.0
libtpu: 0.0.40
codegen_flags: <defaults>
</compile_context>

<pallas_src>
import functools

import jax
import jax.numpy as jnp
from jax.experimental import pallas as pl
from jax.experimental.pallas import tpu as pltpu

LANE = 128                 # lane width (last dim of every block)
SUB = 8                    # f32 sublane granularity
BLOCK_ROWS = 8192          # (8192, 128) f32 = 4 MiB per input buffer per pipeline slot
NCORES = 2                 # leading "parallel" axis: both TCs on v7x, harmless on 1-TC chips
VMEM_LIMIT_BYTES = 64 * 1024 * 1024   # safe on v5e/v6e (128 MiB phys) and v7x (64 MiB phys)


def _relative_loss_kernel(pred_ref, actual_ref, out_ref, acc_ref, *,
                          block_rows, rows, total_blocks, steps_per_core,
                          needs_tail_mask, has_phantom):
    """Accumulate per-core partial sums of |(pred-actual)/actual| over row blocks."""
    c = pl.program_id(0)                 # core-split axis (parallel)
    i = pl.program_id(1)                 # streaming step within this core (arbitrary)
    gb = c * steps_per_core + i          # global row-block index
    last_block = total_blocks - 1

    @pl.when(i == 0)
    def _():
        acc_ref[...] = jnp.zeros_like(acc_ref)

    def rel_all():
        # Upcast in-kernel so bf16/fp16 inputs stream half the HBM bytes.
        p = pred_ref[...].astype(jnp.float32)
        a = actual_ref[...].astype(jnp.float32)
        return jnp.abs((p - a) / a)

    def accumulate(rel):
        if block_rows % SUB == 0:
            # Pure vreg-wise adds; defer cross-sublane/lane reduce to the wrapper.
            acc_ref[...] += rel.reshape(block_rows // SUB, SUB, LANE).sum(axis=0)
        else:
            # Tiny single-block inputs only (block_rows == rows < 8 or not %8).
            acc_ref[pl.ds(0, 1), :] += rel.sum(axis=0, keepdims=True)

    # ---- Fast path: full, in-range blocks; no per-element mask arithmetic. ----
    if needs_tail_mask:
        fast_cond = gb < last_block          # everything strictly before the tail
    elif has_phantom:
        fast_cond = gb < total_blocks        # skip padded-out steps of the last core
    else:
        fast_cond = None                     # every step is a full in-range block

    if fast_cond is None:
        accumulate(rel_all())
    else:
        @pl.when(fast_cond)
        def _():
            accumulate(rel_all())

    # ---- Tail block only: row-level mask for rows past the valid extent. ----
    if needs_tail_mask:
        @pl.when(gb == last_block)
        def _():
            row = jax.lax.broadcasted_iota(jnp.int32, (block_rows, 1), 0)
            valid = (last_block * block_rows + row) < rows       # (block_rows, 1)
            # Keep the select: garbage rows may produce inf/NaN which where()
            # discards; a mask*rel multiply would propagate NaN.
            accumulate(jnp.where(valid, rel_all(), 0.0))

    # ---- Emit this core's (8, 128) partial at its final step. ----
    @pl.when(i == steps_per_core - 1)
    def _():
        out_ref[...] = acc_ref[...].reshape(1, SUB, LANE)


def relative_loss(pred, actual, *, block_rows=None):
    """Mean fractional relative loss: mean(|(pred - actual) / actual|)."""
    assert pred.shape == actual.shape
    n = pred.size
    if n == 0:
        # torch.mean over an empty tensor is NaN; never launch a 0-step grid.
        return jnp.float32(jnp.nan)

    flat_p = pred.reshape(-1)    # native dtype; upcast happens in-kernel
    flat_a = actual.reshape(-1)

    # Pad only to a multiple of one lane row (128).  Pad value 1.0 gives
    # |(1-1)/1| == 0 exactly, so intra-row tails need no mask; the (8,128)
    # divisibility rule applies to the BlockSpec, not the array rows.
    padded = pl.cdiv(n, LANE) * LANE
    if padded != n:
        flat_p = jnp.pad(flat_p, (0, padded - n), constant_values=1)
        flat_a = jnp.pad(flat_a, (0, padded - n), constant_values=1)

    p2 = flat_p.reshape(-1, LANE)   # [rows, 128]
    a2 = flat_a.reshape(-1, LANE)
    rows = p2.shape[0]

    if block_rows is None:
        block_rows = BLOCK_ROWS
    block_rows = min(int(block_rows), rows)

    total_blocks = int(pl.cdiv(rows, block_rows))
    steps_per_core = int(pl.cdiv(total_blocks, NCORES))
    needs_tail_mask = (rows % block_rows) != 0
    has_phantom = steps_per_core * NCORES != total_blocks

    if has_phantom:
        def in_map(c, i):
            # Clamp so the last core's padded-out steps re-read a valid block
            # (their contribution is skipped in-kernel).
            return (jnp.minimum(c * steps_per_core + i, total_blocks - 1), 0)
    else:
        def in_map(c, i):
            return (c * steps_per_core + i, 0)

    kernel = functools.partial(
        _relative_loss_kernel,
        block_rows=block_rows, rows=rows, total_blocks=total_blocks,
        steps_per_core=steps_per_core, needs_tail_mask=needs_tail_mask,
        has_phantom=has_phantom)

    partials = pl.pallas_call(
        kernel,
        out_shape=jax.ShapeDtypeStruct((NCORES, SUB, LANE), jnp.float32),
        grid_spec=pltpu.PrefetchScalarGridSpec(
            num_scalar_prefetch=0,
            grid=(NCORES, steps_per_core),
            in_specs=[
                pl.BlockSpec((block_rows, LANE), in_map),
                pl.BlockSpec((block_rows, LANE), in_map),
            ],
            out_specs=pl.BlockSpec((1, SUB, LANE), lambda c, i: (c, 0, 0)),
            scratch_shapes=[pltpu.VMEM((SUB, LANE), jnp.float32)],
        ),
        compiler_params=pltpu.CompilerParams(
            dimension_semantics=("parallel", "arbitrary"),
            vmem_limit_bytes=VMEM_LIMIT_BYTES,
        ),
    )(p2, a2)

    # Final cross-core + cross-sublane + cross-lane reduce and mean (tiny op).
    return jnp.sum(partials) / jnp.float32(n)


if __name__ == "__main__":
    key = jax.random.PRNGKey(0)
    k_pred, k_act = jax.random.split(key)

    def ref_loss(p, a):
        return jnp.mean(jnp.abs((p - a) / a))

    # 1) Conv-style NCHW output, lane-aligned (2*4*16*16 = 2048 elements).
    shape = (2, 4, 16, 16)
    pred = jax.random.normal(k_pred, shape, dtype=jnp.float32)
    # Keep `actual` away from zero (loss divides by actual).
    actual = jax.random.uniform(k_act, shape, dtype=jnp.float32,
                                minval=0.5, maxval=1.5)
    loss = jax.block_until_ready(relative_loss(pred, actual))
    ref = ref_loss(pred, actual)
    assert jnp.allclose(loss, ref, rtol=1e-5, atol=1e-6), (loss, ref)

    # 2) Non-128-aligned 1-D input (exercises the pad path).
    pred_t = jax.random.normal(k_pred, (1000,), dtype=jnp.float32)
    actual_t = jax.random.uniform(k_act, (1000,), dtype=jnp.float32,
                                  minval=0.5, maxval=1.5)
    loss_t = jax.block_until_ready(relative_loss(pred_t, actual_t))
    ref_t = ref_loss(pred_t, actual_t)
    assert jnp.allclose(loss_t, ref_t, rtol=1e-5, atol=1e-6), (loss_t, ref_t)

    # 3) Multi-block + partial tail block + phantom step on the second core
    #    (small explicit block_rows to exercise the streaming paths at small size).
    pred_m = jax.random.normal(k_pred, (5, 17, 31), dtype=jnp.float32)
    actual_m = jax.random.uniform(k_act, (5, 17, 31), dtype=jnp.float32,
                                  minval=0.5, maxval=1.5)
    loss_m = jax.block_until_ready(relative_loss(pred_m, actual_m, block_rows=8))
    ref_m = ref_loss(pred_m, actual_m)
    assert jnp.allclose(loss_m, ref_m, rtol=1e-5, atol=1e-6), (loss_m, ref_m)

    # 4) Tiny input: rows not a multiple of 8 -> fallback accumulate path.
    pred_s = jax.random.normal(k_pred, (3, 5, 7), dtype=jnp.float32)
    actual_s = jax.random.uniform(k_act, (3, 5, 7), dtype=jnp.float32,
                                  minval=0.5, maxval=1.5)
    loss_s = jax.block_until_ready(relative_loss(pred_s, actual_s))
    ref_s = ref_loss(pred_s, actual_s)
    assert jnp.allclose(loss_s, ref_s, rtol=1e-5, atol=1e-6), (loss_s, ref_s)

    print("KERNEL_OK")
</pallas_src>

<mosaic_0001>
module attributes {stable_mosaic.version = 11 : i64} {
  func.func @_relative_loss_kernel(%arg0: i32, %arg1: i32, %arg2: memref<16x128xf32, #tpu.memory_space<vmem>>, %arg3: memref<16x128xf32, #tpu.memory_space<vmem>>, %arg4: memref<1x8x128xf32, #tpu.memory_space<vmem>>, %arg5: memref<8x128xf32, #tpu.memory_space<vmem>>) attributes {dimension_semantics = [#tpu.dimension_semantics<parallel>, #tpu.dimension_semantics<arbitrary>], iteration_bounds = array<i64: 2, 1>, scalar_prefetch = 0 : i64, scratch_operands = 1 : i64, tpu.core_type = #tpu.core_type<tc>, window_params = [{transform_indices = @transform_0, window_bounds = array<i64: 16, 128>}, {transform_indices = @transform_1, window_bounds = array<i64: 16, 128>}, {transform_indices = @transform_2, window_bounds = array<i64: 1, 8, 128>}]} {
    %c1_i32 = arith.constant 1 : i32
    %0 = arith.muli %arg0, %c1_i32 : i32
    %1 = arith.addi %0, %arg1 : i32
    %c0_i32 = arith.constant 0 : i32
    %2 = arith.cmpi eq, %arg1, %c0_i32 : i32
    %3 = arith.extui %2 : i1 to i32
    %c0_i32_0 = arith.constant 0 : i32
    %4 = arith.cmpi ne, %3, %c0_i32_0 : i32
    scf.if %4 {
      %cst = arith.constant 0.000000e+00 : f32
      %11 = vector.broadcast %cst : f32 to vector<8x128xf32>
      %c0 = arith.constant 0 : index
      %c0_5 = arith.constant 0 : index
      %12 = vector.load %arg5[%c0, %c0_5] : memref<8x128xf32, #tpu.memory_space<vmem>>, vector<8x128xf32>
      tpu.vector_store %arg5[%c0, %c0_5], %11 {strides = array<i32>} : memref<8x128xf32, #tpu.memory_space<vmem>>, vector<8x128xf32>,
    } else {
    }
    %c1_i32_1 = arith.constant 1 : i32
    %5 = arith.cmpi slt, %1, %c1_i32_1 : i32
    %6 = arith.extui %5 : i1 to i32
    %c0_i32_2 = arith.constant 0 : i32
    %7 = arith.cmpi ne, %6, %c0_i32_2 : i32
    scf.if %7 {
      %c0 = arith.constant 0 : index
      %c0_5 = arith.constant 0 : index
      %11 = vector.load %arg2[%c0, %c0_5] : memref<16x128xf32, #tpu.memory_space<vmem>>, vector<16x128xf32>
      %c0_6 = arith.constant 0 : index
      %c0_7 = arith.constant 0 : index
      %12 = vector.load %arg3[%c0_6, %c0_7] : memref<16x128xf32, #tpu.memory_space<vmem>>, vector<16x128xf32>
      %13 = arith.subf %11, %12 : vector<16x128xf32>
      %14 = arith.divf %13, %12 : vector<16x128xf32>
      %15 = math.absf %14 : vector<16x128xf32>
      %c0_8 = arith.constant 0 : index
      %c0_9 = arith.constant 0 : index
      %16 = vector.load %arg5[%c0_8, %c0_9] : memref<8x128xf32, #tpu.memory_space<vmem>>, vector<8x128xf32>
      %17 = vector.shape_cast %15 : vector<16x128xf32> to vector<2x8x128xf32>
      %cst = arith.constant dense<0.000000e+00> : vector<8x128xf32>
      %18 = vector.multi_reduction <add>, %17, %cst [0] : vector<2x8x128xf32> to vector<8x128xf32>
      %19 = arith.addf %16, %18 : vector<8x128xf32>
      %c0_10 = arith.constant 0 : index
      %c0_11 = arith.constant 0 : index
      %20 = vector.load %arg5[%c0_10, %c0_11] : memref<8x128xf32, #tpu.memory_space<vmem>>, vector<8x128xf32>
      tpu.vector_store %arg5[%c0_10, %c0_11], %19 {strides = array<i32>} : memref<8x128xf32, #tpu.memory_space<vmem>>, vector<8x128xf32>,
    } else {
    }
    %c0_i32_3 = arith.constant 0 : i32
    %8 = arith.cmpi eq, %arg1, %c0_i32_3 : i32
    %9 = arith.extui %8 : i1 to i32
    %c0_i32_4 = arith.constant 0 : i32
    %10 = arith.cmpi ne, %9, %c0_i32_4 : i32
    scf.if %10 {
      %c0 = arith.constant 0 : index
      %c0_5 = arith.constant 0 : index
      %11 = vector.load %arg5[%c0, %c0_5] : memref<8x128xf32, #tpu.memory_space<vmem>>, vector<8x128xf32>
      %12 = vector.shape_cast %11 : vector<8x128xf32> to vector<1x8x128xf32>
      %c0_6 = arith.constant 0 : index
      %c0_7 = arith.constant 0 : index
      %c0_8 = arith.constant 0 : index
      %13 = vector.load %arg4[%c0_6, %c0_7, %c0_8] : memref<1x8x128xf32, #tpu.memory_space<vmem>>, vector<1x8x128xf32>
      tpu.vector_store %arg4[%c0_6, %c0_7, %c0_8], %12 {strides = array<i32>} : memref<1x8x128xf32, #tpu.memory_space<vmem>>, vector<1x8x128xf32>,
    } else {
    }
    return
  }
  func.func @transform_0(%arg0: i32, %arg1: i32) -> (i32, i32) {
    %c1_i32 = arith.constant 1 : i32
    %0 = arith.muli %arg0, %c1_i32 : i32
    %1 = arith.addi %0, %arg1 : i32
    %c0_i32 = arith.constant 0 : i32
    %2 = arith.minsi %1, %c0_i32 : i32
    %c0_i32_0 = arith.constant 0 : i32
    %c0_i32_1 = arith.constant 0 : i32
    return %2, %c0_i32_0 : i32, i32
  }
  func.func @transform_1(%arg0: i32, %arg1: i32) -> (i32, i32) {
    %c1_i32 = arith.constant 1 : i32
    %0 = arith.muli %arg0, %c1_i32 : i32
    %1 = arith.addi %0, %arg1 : i32
    %c0_i32 = arith.constant 0 : i32
    %2 = arith.minsi %1, %c0_i32 : i32
    %c0_i32_0 = arith.constant 0 : i32
    %c0_i32_1 = arith.constant 0 : i32
    return %2, %c0_i32_0 : i32, i32
  }
  func.func @transform_2(%arg0: i32, %arg1: i32) -> (i32, i32, i32) {
    %c0_i32 = arith.constant 0 : i32
    %c0_i32_0 = arith.constant 0 : i32
    %c0_i32_1 = arith.constant 0 : i32
    return %arg0, %c0_i32, %c0_i32_0 : i32, i32, i32
  }
}

</mosaic_0001>

<bundles_post_ra>
// kernel: tpu_custom_call.1
= control target key start
LH: loop header
LB: loop body
LE: loop exit
PB: predicated region body
PF: predicated region fallthrough
CT: control target
= control target key end

     0   :  { %7 = vsyncpa [#allocation4], 0  ;;  %s900_s0 = inlined_call_operand.hbm [shape: f32[16,128], index: 0, kind: input, shape index: {}]   ;;  %s901_s1 = inlined_call_operand.hbm [shape: f32[16,128], index: 1, kind: input, shape index: {}]   ;;  %s902_s2 = inlined_call_operand.hbm [shape: f32[2,8,128], index: 2, kind: output, shape index: {}]  }
   0x1   :  { %9 = vsyncpa [#allocation4 + $0x1], 0 }
   0x2   :  { %10 = vsyncpa [#allocation7], 0 }
   0x3   :  { %12 = vsyncpa [#allocation7 + $0x1], 0 }
   0x4   :  { %13 = vsyncpa [#allocation5], 0 }
   0x5   :  { %15 = vsyncpa [#allocation5 + $0x1], 0  ;;  %s695_s9 = smov 0   ;;  %s697_s10 = smov 0  }
   0x6   :  { %s699_s11 = smov 0   ;;  %s701_s12 = smov 0  }
   0x7   :  { %s703_s13 = smov 0   ;;  %s705_s14 = smov 0  }
   0x8   :  { %s707_s15 = smov 0   ;;  %s709_s16 = smov 0  }
   0x9 LB: > { %s386_s17 = sadd.s32 4294967295, %s672_s16   ;;  %s387_s18 = sadd.s32 4294967294, %s672_s16   ;;  %s672_s16 = sphi %s709_s16, %s21_s16   ;;  %s668_s15 = sphi %s707_s15, %s921_s15   ;;  %s664_s14 = sphi %s705_s14, %s920_s14   ;;  %s660_s13 = sphi %s703_s13, %s890_s13   ;;  %s656_s12 = sphi %s701_s12, %s919_s12   ;;  %s652_s11 = sphi %s699_s11, %s918_s11   ;;  %s648_s10 = sphi %s697_s10, %s917_s10   ;;  %s644_s9 = sphi %s695_s9, %s916_s9  }
   0xa   : > { %s33_s19 = sadd.s32 1, %s668_s15  ;;  %p641_p1 = scmp.ne.s32.totalorder %s660_s13, 0 }
   0xb   : > { %p35_p0 = scmp.ge.s32.totalorder %s33_s19, 2  ;;  %p54_p2 = scmp.eq.s32.totalorder %s672_s16, 0 }
   0xc   : > { %p59_p3 = scmp.ne.s32.totalorder %s660_s13, %s656_s12  ;;  %p60_p5 = scmp.eq.s32.totalorder %s386_s17, 0 }
   0xd   : > { %s923_s19 = smov (%p35_p0, %s33_s19), 0  ;;  %p741_p4 = por %p641_p1, %p54_p2 }
   0xe   : > { %p745_p6 = por %p60_p5, %p59_p3  ;;  %s101_s22 = ssub.s32 %s668_s15, %s923_s19 }
   0xf   : > { %p102_p7 = scmp.eq.s32.totalorder %s101_s22, 0  ;;  %s104_s23 = sadd.s32 1, %s652_s11 }
  0x10   : > { %s906_s21 = scalar_select %p745_p6, 1, 0 }
  0x11   : > { %s753_s24 = scalar_select %p102_p7, %s652_s11, %s104_s23  }
  0x12   : > { %p114_p8 = scmp.ne.s32.totalorder %s652_s11, %s648_s10  ;;  %p115_p9 = scmp.eq.s32.totalorder %s386_s17, 1 }
  0x13   : > { %p120_p10 = scmp.ne.s32.totalorder %s648_s10, %s644_s9  ;;  %p121_p11 = scmp.eq.s32.totalorder %s387_s18, 1 }
  0x14   : > { %p759_p12 = por %p115_p9, %p114_p8  ;;  %p424_p1 = scmp.lt.s32.totalorder %s672_s16, 2 }
  0x15   : > { %p764_p0 = por %p121_p11, %p120_p10  ;;  %s674_s27 = smov [#allocation3]  }
  0x16   : > { %s907_s25 = scalar_select %p759_p12, 1, 0 }
  0x17   : > { %s908_s26 = scalar_select %p764_p0, 1, 0 }
  0x18   : > { %s155_s28 = sshll.u32 %s674_s27, 4  ;;  %p771_p2 = pnand %p424_p1, %p741_p4  ;;  %s156_s28 = int_to_ptr.vmem [resolvable:$true] %s155_s28 }
  0x19   : > { %s505_s4 = scalar_lea.hbm %s900_s0, 256 }
  0x1a   : > { %p506_p3 = scmp.ne.s32.totalorder %s900_s0, %s505_s4  ;;  %p507_p5 = pneg %p771_p2 }
  0x1b   : > { %p512_p8 = scmp.lt.u32.totalorder %s505_s4, %s505_s4  ;;  %p514_p9 = scmp.lt.u32.totalorder %s505_s4, %s900_s0 }
  0x1c   : > { %p508_p7 = pnand %p507_p5, %p506_p3 }
  0x1d   : > { %p515_p10 = por %p514_p9, %p512_p8 }
  0x1e   : > { %p509_p4 = pneg %p508_p7 }
  0x20   : > { %p516_p11 = pnand %p515_p10, %p509_p4 }
  0x22   : > { %519 = shalt.err (!%p516_p11)
}
  0x23   : > { %s520_s12 = scalar_lea.vmem %s156_s28, 256  ;;  %s527_s17 = scalar_lea.vmem %s156_s28, 512 }
  0x24   : > { %p521_p1 = scmp.ne.s32.totalorder %s156_s28, %s520_s12  ;;  %p528_p12 = scmp.lt.s32.totalorder %s156_s28, %s156_s28 }
  0x25   : > { %p529_p6 = scmp.lt.s32.totalorder %s527_s17, %s520_s12 }
  0x26   : > { %p523_p13 = pnand %p521_p1, %p507_p5 }
  0x27   : > { %p530_p3 = por %p529_p6, %p528_p12 }
  0x28   : > { %p524_p0 = pneg %p523_p13 }
  0x2a   : > { %p531_p7 = pnand %p530_p3, %p524_p0 }
  0x2c   : > { %534 = shalt.err (!%p531_p7)
}
  0x2d   : > { %s675_s18 = smov 128   ;;  %s676_s20 = smov 8  }
  0x2e   : > { %416 = dma.hbm_to_vmem [thread:$0]  (!%p771_p2), %s900_s0, 256, %s156_s28, [#allocation4], %s675_s18, %s675_s18, %s676_s20  }
  0x2f   : > { %p396_p13 = scmp.ge.s32.totalorder %s672_s16, 1  ;;  %p187_p4 = scmp.lt.s32.totalorder %s672_s16, 3 }
  0x30   : > { %s677_s30 = smov [#allocation6]   ;;  %s535_s6 = scalar_lea.hbm %s901_s1, 256 }
  0x31   : > { %p802_p8 = pnand %p396_p13, %p187_p4  ;;  %s179_s3 = sshll.u32 %s677_s30, 4  ;;  %s180_s3 = int_to_ptr.vmem [resolvable:$true] %s179_s3 }
  0x32   : > { %p536_p6 = scmp.ne.s32.totalorder %s901_s1, %s535_s6  ;;  %p542_p9 = scmp.lt.u32.totalorder %s535_s6, %s535_s6 }
  0x33   : > { %s910_s27 = scalar_select %p802_p8, 1, 0 }
  0x34   : > { %p538_p12 = pnand %p536_p6, %p507_p5  ;;  %p544_p10 = scmp.lt.u32.totalorder %s535_s6, %s901_s1 }
  0x36   : > { %p539_p0 = pneg %p538_p12  ;;  %p545_p11 = por %p544_p10, %p542_p9 }
  0x38   : > { %p546_p1 = pnand %p545_p11, %p539_p0 }
  0x3a   : > { %549 = shalt.err (!%p546_p1)
}
  0x3b   : > { %s550_s17 = scalar_lea.vmem %s180_s3, 256  ;;  %s557_s22 = scalar_lea.vmem %s180_s3, 512 }
  0x3c   : > { %p551_p3 = scmp.ne.s32.totalorder %s180_s3, %s550_s17  ;;  %p558_p4 = scmp.lt.s32.totalorder %s180_s3, %s180_s3 }
  0x3d   : > { %p559_p8 = scmp.lt.s32.totalorder %s557_s22, %s550_s17 }
  0x3e   : > { %p553_p7 = pnand %p551_p3, %p507_p5 }
  0x3f   : > { %p560_p6 = por %p559_p8, %p558_p4 }
  0x40   : > { %p554_p13 = pneg %p553_p7 }
  0x42   : > { %p561_p12 = pnand %p560_p6, %p554_p13 }
  0x44   : > { %564 = shalt.err (!%p561_p12)
}
  0x45   : > { %419 = dma.hbm_to_vmem [thread:$0]  (!%p771_p2), %s901_s1, 256, %s180_s3, [#allocation7], %s675_s18, %s675_s18, %s676_s20  }
  0x46   : > { %p911_p0 = scmp.ne.s32.totalorder %s910_s27, 0 }
  0x47   : > { %s193_s4 = sand.u32 (!%p911_p0), 1, %s660_s13   ;;  %p912_p5 = scmp.ne.s32.totalorder (!%p911_p0), %s906_s21, 0 }
  0x48   : > { %191 = sbr.rel (%p911_p0) target bundleno = 130 (0x82), region = 28  ;;  %s397_s5 = sshll.u32 (!%p911_p0), %s193_s4, 4 }
  0x49   : > { %s194_s6 = scalar_lea.sflag (!%p911_p0), [#allocation4], %s193_s4  ;;  %s197_s7 = scalar_lea.vmem (!%p911_p0), [#allocation3], %s397_s5 }
  0x4f   : > { %630 = dma.done.wait (%p912_p5), %s194_s6, 256  }
  0x50   : > { %632 = vsyncadd (%p912_p5), %s194_s6, 4294967040  ;;  %s203_s29 = scalar_lea.sflag [#allocation7], %s193_s4  ;;  %s206_s8 = scalar_lea.vmem [#allocation6], %s397_s5 }
  0x51   : > { %634 = dma.done.wait (%p912_p5), %s203_s29, 256  }
  0x52   : > { %636 = vsyncadd (%p912_p5), %s203_s29, 4294967040  ;;  %s229_s18 = sand.u32 1, %s648_s10   ;;  %v678_v0 = vmov 0.0   ;;  %p400_p2 = scmp.ge.s32.totalorder %s664_s14, 1 }
  0x53   : > { %s843_s20 = sshll.u32 %s229_s18, 3  ;;  %245 = vst [vmem:[#allocation2] sm:$0xff] %v678_v0  ;;  %v252_v1 = vld [vmem:[%s206_s8] sm:$0xff] (!%p400_p2)  ;;  %v253_v2 = vld [vmem:[%s206_s8 + $0x8] sm:$0xff] (!%p400_p2) }
  0x54   : > { %s231_s27 = scalar_lea.vmem [#allocation8], %s843_s20  ;;  %249 = sbr.rel (%p400_p2) target bundleno = 105 (0x69), region = 44  ;;  %501 = vrcp.f32 (!%p400_p2), %v252_v1  ;;  %v250_v3 = vld [vmem:[%s197_s7] sm:$0xff] (!%p400_p2)  ;;  %v251_v4 = vld [vmem:[%s197_s7 + $0x8] sm:$0xff] (!%p400_p2) }
  0x55   : > { %503 = vrcp.f32 (!%p400_p2), %v253_v2  ;;  %v254_v5 = vsub.f32 (!%p400_p2), %v250_v3, %v252_v1  ;;  %v255_v6 = vsub.f32 (!%p400_p2), %v251_v4, %v253_v2 }
  0x5a   : > { %v262_v13 = vld [vmem:[#allocation2] sm:$0xff] (!%p400_p2) }
  0x5e   : > { %v502_v7 = vpop.eup %501 }
  0x5f   : > { %v504_v8 = vpop.eup %503  ;;  %v257_v9 = vmul.f32 %v502_v7, %v254_v5 }
  0x60   : > { %v259_v10 = vmul.f32 %v504_v8, %v255_v6 }
  0x61   : > { %v260_v11 = vand.u32 2147483647, %v257_v9 }
  0x62   : > { %v261_v12 = vand.u32 2147483647, %v259_v10 }
  0x64   : > { %v263_v14 = vadd.f32 %v261_v12, %v260_v11 }
  0x66   : > { %v264_v15 = vadd.f32 %v263_v14, %v262_v13 }
  0x68   : > { %265 = vst [vmem:[#allocation2] sm:$0xff] %v264_v15 }
  0x69 PF: > { %s402_s21 = sshll.u32 %s664_s14, 7  ;;  %s285_s17 = sshll.u32 %s231_s27, 4  ;;  %s286_s17 = int_to_ptr.vmem [resolvable:$true] %s285_s17 }
  0x6a   : > { %s851_s12 = scalar_lea.hbm %s902_s2, %s402_s21  ;;  %s272_s22 = scalar_lea.sflag [#allocation5], %s229_s18 }
  0x6b   : > { %s565_s23 = scalar_lea.vmem %s286_s17, 128  ;;  %p913_p9 = scmp.ne.s32.totalorder %s907_s25, 0 }
  0x6c   : > { %p566_p8 = scmp.ne.s32.totalorder %s286_s17, %s565_s23  ;;  %s679_s30 = smov [#allocation8]  }
  0x6d   : > { %s569_s4 = sshll.u32 %s679_s30, 4  ;;  %s570_s4 = int_to_ptr.vmem [resolvable:$false] %s569_s4 }
  0x6e   : > { %p567_p10 = pnand %p566_p8, %p913_p9  ;;  %s571_s5 = scalar_lea.vmem %s570_s4, 256 }
  0x6f   : > { %v269_v16 = vld [vmem:[#allocation2] sm:$0xff]  ;;  %p572_p1 = scmp.lt.s32.totalorder %s286_s17, %s570_s4  ;;  %p573_p3 = scmp.lt.s32.totalorder %s571_s5, %s565_s23 }
  0x70   : > { %270 = vst [vmem:[%s231_s27] sm:$0xff] %v269_v16  ;;  %p568_p11 = pneg %p567_p10 }
  0x71   : > { %p574_p7 = por %p573_p3, %p572_p1 }
  0x73   : > { %p575_p13 = pnand %p574_p7, %p568_p11 }
  0x75   : > { %578 = shalt.err (!%p575_p13)
}
  0x76   : > { %s579_s14 = scalar_lea.hbm %s851_s12, 128  ;;  %s583_s29 = scalar_lea.hbm %s902_s2, 256 }
  0x77   : > { %p580_p4 = scmp.ne.s32.totalorder %s851_s12, %s579_s14  ;;  %p584_p0 = scmp.lt.u32.totalorder %s851_s12, %s902_s2 }
  0x78   : > { %p585_p5 = scmp.lt.u32.totalorder %s583_s29, %s579_s14  ;;  %p587_p8 = scmp.lt.u32.totalorder %s579_s14, %s851_s12 }
  0x79   : > { %p581_p6 = pnand %p580_p4, %p913_p9 }
  0x7a   : > { %p586_p2 = por %p585_p5, %p584_p0 }
  0x7b   : > { %p582_p12 = pneg %p581_p6 }
  0x7c   : > { %p588_p10 = por %p587_p8, %p586_p2 }
  0x7e   : > { %p589_p11 = pnand %p588_p10, %p582_p12 }
  0x80   : > { %592 = shalt.err (!%p589_p11)
}
  0x81   : > { %411 = dma.vmem_to_hbm [thread:$0]  (%p913_p9), %s286_s17, 128, %s851_s12, %s272_s22  }
  0x82 PF: > { %s297_s20 = sand.u32 1, %s644_s9   ;;  %p914_p1 = scmp.ne.s32.totalorder %s908_s26, 0 }
  0x83   : > { %p915_p3 = scmp.ge.s32.totalorder %s672_s16, 2  ;;  %s298_s27 = scalar_lea.sflag [#allocation5], %s297_s20 }
  0x85   : > { %p421_p7 = pnand %p915_p3, %p914_p1 }
  0x87   : > { %638 = dma.done.wait (!%p421_p7), %s298_s27, 128  }
  0x88   : > { %640 = vsyncadd (!%p421_p7), %s298_s27, 4294967168  ;;  %s21_s16 = sadd.s32 1, %s672_s16   ;;  %s916_s9 = smov %s648_s10 }
  0x89   : > { %p18_p13 = scmp.ge.s32.totalorder %s21_s16, 4   ;;  %s917_s10 = smov %s652_s11 }
  0x8a   : > { %s918_s11 = smov %s753_s24  ;;  %s919_s12 = smov %s660_s13 }
  0x8b   : > { %s890_s13 = smov 0   ;;  %s920_s14 = smov %s668_s15 }
  0x8c   : > { %s921_s15 = smov %s923_s19  ;;  %20 = sbr.rel (!%p18_p13) target bundleno = 9 (0x9), region = 98 }
  0x93   :  { %303 = vsyncpa [#allocation4], 1 }
  0x94   :  { %305 = vsyncpa [#allocation4 + $0x1], 1 }
  0x95   :  { %306 = vsyncpa [#allocation7], 1 }
  0x96   :  { %308 = vsyncpa [#allocation7 + $0x1], 1 }
  0x97   :  { %309 = vsyncpa [#allocation5], 1 }
  0x98   :  { %311 = vsyncpa [#allocation5 + $0x1], 1 }

</bundles_post_ra>
